<compile_context>
chip_gen: v6e
topology: v6e:2x2x1
jax: 0.10.0
libtpu: 0.0.40
codegen_flags: <defaults>
</compile_context>

<pallas_src>
import functools

import jax
import jax.numpy as jnp
from jax.experimental import pallas as pl
from jax.experimental.pallas import tpu as pltpu


def _fast_recip(x):
    """EUP-cheap reciprocal: approx vrcp (1 EUP push) + one Newton step on the VPU."""
    r = pl.reciprocal(x, approx=True)
    return r * (2.0 - x * r)


def _ce_sum_kernel(x_ref, lab_ref, out_ref):
    """nn.CrossEntropyLoss(reduction='sum') numerator: sum_i [logsumexp(x_i) - x_i[y_i]]."""
    f32 = jnp.float32
    x = x_ref[...].astype(f32)                                   # (R, C)
    lab = lab_ref[...]                                           # (R, 1) int32
    m = jnp.max(x, axis=-1, keepdims=True)
    e = jnp.exp(x - m)
    lse = m + jnp.log(jnp.sum(e, axis=-1, keepdims=True))
    col = jax.lax.broadcasted_iota(jnp.int32, x.shape, 1)
    picked = jnp.sum(jnp.where(col == lab, x, f32(0.0)), axis=-1, keepdims=True)
    total = jnp.sum(lse - picked)
    out_ref[...] = jnp.zeros(out_ref.shape, out_ref.dtype) + total


def _semi_loss_u_kernel(u_ref, out_ref, *, n, c, mu, tmu, inv_t, inv_t_int):
    """Per-block fused partial sums for JS_loss and loss_u over the unlabeled logits.

    u_ref: (TMu, n*C) block of the contiguous (Mu_pad, n*C) slab; lane slice j*C:(j+1)*C
    is logits_u[:, j, :] for this block of Mu rows.
    """
    f32 = jnp.float32
    inv_n = f32(1.0 / n)

    lse_sum = jnp.zeros((tmu, 1), f32)        # sum over n of per-row logsumexp(u)
    u_sum = jnp.zeros((tmu, c), f32)          # sum over n of u
    p_sum = jnp.zeros((tmu, c), f32)          # sum over n of softmax(u)
    pt_sum = jnp.zeros((tmu, c), f32)         # sum over n of softmax(u / T)

    for j in range(n):                        # unrolled at trace time (n is small)
        uj = u_ref[:, j * c:(j + 1) * c].astype(f32)      # (TMu, C) static lane slice
        mj = jnp.max(uj, axis=-1, keepdims=True)
        ej = jnp.exp(uj - mj)                              # the only mandatory exp pass
        sj = jnp.sum(ej, axis=-1, keepdims=True)
        lse_sum = lse_sum + (mj + jnp.log(sj))
        u_sum = u_sum + uj
        p_sum = p_sum + ej * _fast_recip(sj)

        # temperature softmax: exp((u-m)/T) == e**(1/T); for small integer 1/T this is
        # pure VPU multiplies (no second EUP exp pass).  max(u/T) == max(u)/T for T > 0.
        if inv_t_int is not None:
            etj = ej
            for _ in range(inv_t_int - 1):
                etj = etj * ej
        else:
            etj = jnp.exp((uj - mj) * f32(inv_t))
        stj = jnp.sum(etj, axis=-1, keepdims=True)
        pt_sum = pt_sum + etj * _fast_recip(stj)

    y_hat = p_sum * inv_n                     # (TMu, C) mean over n of softmax(u)
    pseudo = pt_sum * inv_n                   # (TMu, C) mean over n of softmax(u/T)
    # F.kl_div convention: 0 * log(0) == 0 (the pure-JAX ref would NaN on underflowed y_hat).
    log_yh = jnp.where(y_hat > 0, jnp.log(y_hat), f32(0.0))

    # Fused per-Mu-row partials (y_hat / pseudo are constant over n; sum_c pseudo == 1):
    #   JS_part   = n * sum(y_hat * log y_hat) - sum(y_hat * sum_n u)
    #   loss_u_pt = sum_n lse(u)               - sum(pseudo * sum_n u)
    js_row = (f32(n) * jnp.sum(y_hat * log_yh, axis=-1, keepdims=True)
              - jnp.sum(y_hat * u_sum, axis=-1, keepdims=True))
    lu_row = lse_sum - jnp.sum(pseudo * u_sum, axis=-1, keepdims=True)

    # mask rows added by padding Mu up to the tile
    row = jax.lax.broadcasted_iota(jnp.int32, (tmu, 1), 0) + pl.program_id(0) * tmu
    valid = row < mu
    js_part = jnp.sum(jnp.where(valid, js_row, f32(0.0)))
    lu_part = jnp.sum(jnp.where(valid, lu_row, f32(0.0)))

    lane = jax.lax.broadcasted_iota(jnp.int32, out_ref.shape, 2)
    out_ref[...] = jnp.where(lane == 0, js_part,
                             jnp.where(lane == 1, lu_part, f32(0.0))).astype(out_ref.dtype)


def _pick_mu_tile(mu, n, c, target_block_bytes=1 << 20, cap=1024):
    """Mu tile: multiple of 8 sublanes, ~1 MiB block, never larger than needed."""
    round_up8 = lambda v: ((v + 7) // 8) * 8
    rows = max(8, (target_block_bytes // max(1, n * c * 4)) // 8 * 8)
    return max(8, min(round_up8(mu), rows, cap))


def semi_loss(logits, y, b, n, size_s, temperature, mu_tile=None):
    """logits: (T, C) float (f32 or bf16), y: (size_s,) int.  Returns (loss_s, JS_loss, loss_u)."""
    assert temperature > 0, "softmax temperature must be positive"
    T, C = logits.shape
    content_rows = T - b
    mu = (content_rows - n * size_s) // n
    assert n * size_s + mu * n == content_rows, (T, b, n, size_s)

    # ---------------- labeled CE: tiny single-step pallas_call (kept off the Mu grid) ----
    y = y.astype(jnp.int32)
    xl = jnp.concatenate([logits[: n * size_s],
                          logits[content_rows: content_rows + size_s]], axis=0)
    lab = jnp.concatenate([jnp.repeat(y, n), y])[:, None]        # ((n+1)*size_s, 1) int32
    ce = pl.pallas_call(
        _ce_sum_kernel,
        out_shape=jax.ShapeDtypeStruct((8, 128), jnp.float32),
    )(xl, lab)

    # ---------------- unlabeled losses: gridded over Mu ----------------------------------
    # (Mu*n, C) slice -> (Mu, n*C): identical row-major layout, free reshape, no transpose.
    u2 = logits[n * size_s: content_rows].reshape(mu, n * C)
    tmu = mu_tile if mu_tile is not None else _pick_mu_tile(mu, n, C)
    assert tmu % 8 == 0
    g = pl.cdiv(mu, tmu)
    mu_pad = g * tmu
    if mu_pad != mu:
        u2 = jnp.pad(u2, ((0, mu_pad - mu), (0, 0)))             # padded rows masked in-kernel

    inv_t = 1.0 / float(temperature)
    it_round = int(round(inv_t))
    inv_t_int = it_round if (abs(inv_t - it_round) < 1e-6 and 1 <= it_round <= 4) else None

    kernel = functools.partial(_semi_loss_u_kernel, n=n, c=C, mu=mu, tmu=tmu,
                               inv_t=inv_t, inv_t_int=inv_t_int)
    parts = pl.pallas_call(
        kernel,
        out_shape=jax.ShapeDtypeStruct((g, 8, 128), jnp.float32),
        grid_spec=pltpu.PrefetchScalarGridSpec(
            num_scalar_prefetch=0,
            grid=(g,),
            in_specs=[pl.BlockSpec((tmu, n * C), lambda i: (i, 0))],
            out_specs=pl.BlockSpec((1, 8, 128), lambda i: (i, 0, 0)),
        ),
        compiler_params=pltpu.CompilerParams(dimension_semantics=("parallel",)),
    )(u2)

    row = parts[:, 0, :]                                         # (g, 128) per-block partials
    loss_s = ce[0, 0] / jnp.float32(n * size_s + b)
    js = jnp.sum(row[:, 0]) / jnp.float32(mu * n * C)
    loss_u = jnp.sum(row[:, 1]) / jnp.float32(mu * n)
    return loss_s, js, loss_u


def semi_loss_ref(logits, y, b, n, size_s, temperature):
    """Pure-JAX reference mirroring the PyTorch module exactly."""
    T, C = logits.shape
    content = logits[: T - b]
    style = logits[T - b: T - b + size_s]
    logits_s = content[: n * size_s]
    logits_u = content[n * size_s:].reshape(-1, n, C)
    y_ = jnp.repeat(y, n)

    def ce_sum(x, lab):
        ls = jax.nn.log_softmax(x, axis=-1)
        return -jnp.sum(jnp.take_along_axis(ls, lab[:, None], axis=-1))

    loss_s = (ce_sum(logits_s, y_) + ce_sum(style, y)) / (n * size_s + b)
    p_u = jax.nn.softmax(logits_u, axis=-1)
    y_hat = jnp.mean(p_u, axis=1, keepdims=True)
    js = jnp.mean(y_hat * (jnp.log(y_hat) - logits_u))
    pseudo = jnp.mean(jax.nn.softmax(logits_u / temperature, axis=-1), axis=1, keepdims=True)
    ll = jax.nn.log_softmax(logits_u, axis=-1)
    loss_u = -jnp.sum(pseudo * ll) / (logits_u.shape[0] * n)
    return loss_s, js, loss_u


if __name__ == "__main__":
    key = jax.random.PRNGKey(0)
    b, n, size_s, Mu, C = 8, 2, 8, 8, 128
    temperature = 0.5
    T = n * size_s + Mu * n + b     # labeled content + unlabeled content + style block

    k1, k2 = jax.random.split(key)
    logits = jax.random.normal(k1, (T, C), dtype=jnp.float32)
    y = jax.random.randint(k2, (size_s,), 0, C, dtype=jnp.int32)

    out = semi_loss(logits, y, b, n, size_s, temperature)
    out = jax.block_until_ready(out)

    ref = semi_loss_ref(logits, y, b, n, size_s, temperature)
    for got, want in zip(out, ref):
        assert jnp.allclose(got, want, rtol=5e-4, atol=5e-5), (got, want)

    print("KERNEL_OK")
</pallas_src>

<mosaic_0001>
module attributes {stable_mosaic.version = 11 : i64} {
  func.func @_ce_sum_kernel(%arg0: memref<24x128xf32, #tpu.memory_space<vmem>>, %arg1: memref<24x1xi32, #tpu.memory_space<vmem>>, %arg2: memref<8x128xf32, #tpu.memory_space<vmem>>) attributes {dimension_semantics = [], scalar_prefetch = 0 : i64, scratch_operands = 0 : i64, tpu.core_type = #tpu.core_type<tc>} {
    %c0 = arith.constant 0 : index
    %c0_0 = arith.constant 0 : index
    %0 = vector.load %arg0[%c0, %c0_0] : memref<24x128xf32, #tpu.memory_space<vmem>>, vector<24x128xf32>
    %c0_1 = arith.constant 0 : index
    %c0_2 = arith.constant 0 : index
    %1 = vector.load %arg1[%c0_1, %c0_2] : memref<24x1xi32, #tpu.memory_space<vmem>>, vector<24x1xi32>
    %cst = arith.constant dense<0xFF800000> : vector<24xf32>
    %2 = vector.multi_reduction <maximumf>, %0, %cst [1] : vector<24x128xf32> to vector<24xf32>
    %3 = vector.shape_cast %2 : vector<24xf32> to vector<24x1xf32>
    %4 = vector.broadcast %3 : vector<24x1xf32> to vector<24x128xf32>
    %5 = arith.subf %0, %4 : vector<24x128xf32>
    %6 = math.exp %5 : vector<24x128xf32>
    %cst_3 = arith.constant dense<0.000000e+00> : vector<24xf32>
    %7 = vector.multi_reduction <add>, %6, %cst_3 [1] : vector<24x128xf32> to vector<24xf32>
    %8 = vector.shape_cast %7 : vector<24xf32> to vector<24x1xf32>
    %9 = math.log %8 : vector<24x1xf32>
    %10 = arith.addf %3, %9 : vector<24x1xf32>
    %11 = tpu.iota {dimensions = array<i32: 1>} : vector<24x128xi32>
    %12 = vector.broadcast %1 : vector<24x1xi32> to vector<24x128xi32>
    %13 = arith.cmpi eq, %11, %12 : vector<24x128xi32>
    %cst_4 = arith.constant 0.000000e+00 : f32
    %14 = vector.broadcast %cst_4 : f32 to vector<24x128xf32>
    %15 = arith.select %13, %0, %14 : vector<24x128xi1>, vector<24x128xf32>
    %cst_5 = arith.constant dense<0.000000e+00> : vector<24xf32>
    %16 = vector.multi_reduction <add>, %15, %cst_5 [1] : vector<24x128xf32> to vector<24xf32>
    %17 = vector.shape_cast %16 : vector<24xf32> to vector<24x1xf32>
    %18 = arith.subf %10, %17 : vector<24x1xf32>
    %19 = vector.shape_cast %18 : vector<24x1xf32> to vector<1x24x1xf32>
    %cst_6 = arith.constant dense<0.000000e+00> : vector<1xf32>
    %20 = vector.multi_reduction <add>, %19, %cst_6 [1, 2] : vector<1x24x1xf32> to vector<1xf32>
    %21 = vector.shape_cast %20 : vector<1xf32> to vector<1x1x1xf32>
    %22 = vector.extract %21[0, 0, 0] : f32 from vector<1x1x1xf32>
    %cst_7 = arith.constant 0.000000e+00 : f32
    %23 = vector.broadcast %cst_7 : f32 to vector<8x128xf32>
    %24 = vector.broadcast %22 : f32 to vector<8x128xf32>
    %25 = arith.addf %23, %24 : vector<8x128xf32>
    %c0_8 = arith.constant 0 : index
    %c0_9 = arith.constant 0 : index
    %26 = vector.load %arg2[%c0_8, %c0_9] : memref<8x128xf32, #tpu.memory_space<vmem>>, vector<8x128xf32>
    tpu.vector_store %arg2[%c0_8, %c0_9], %25 {strides = array<i32>} : memref<8x128xf32, #tpu.memory_space<vmem>>, vector<8x128xf32>,
    return
  }
}

</mosaic_0001>

<bundles_post_ra>
// kernel: tpu_custom_call.1
= control target key start
LH: loop header
LB: loop body
LE: loop exit
PB: predicated region body
PF: predicated region fallthrough
CT: control target
= control target key end

     0   :  { %v146_v3 = vmov 0   ;;  %s184_s0 = inlined_call_operand.vmem [shape: f32[24,128], index: 0, kind: input, shape index: {}]   ;;  %s185_s1 = inlined_call_operand.vmem [shape: s32[24,1], index: 1, kind: input, shape index: {}]   ;;  %s186_s2 = inlined_call_operand.hbm [shape: f32[8,128], index: 2, kind: output, shape index: {}]  }
   0x1   :  { %v12_v0 = vld [vmem:[%s184_s0] sm:$0xff]  ;;  %v14_v1 = vld [vmem:[%s184_s0 + $0x10] sm:$0xff]  ;;  %v13_v2 = vld [vmem:[%s184_s0 + $0x8] sm:$0xff]  ;;  %110 = vset.pattern.permute.xlu1 %v146_v3  ;;  %111 = vset.pattern.permute.xlu0 %v146_v3 }
   0x2   :  { %18 = vmax.xlane.f32.xlu0 %v12_v0  ;;  %22 = vmax.xlane.f32.xlu1 %v14_v1 }
   0x3   :  { %7 = vsyncpa [#allocation3], 0  ;;  %v15_v4 = vld [vmem:[%s185_s1] sm:$0xff]  ;;  %v17_v5 = vld [vmem:[%s185_s1 + $0x10] sm:$0xff]  ;;  %v48_v16 = vlaneseq  ;;  %vm74_vm3 = vcmask 7168   ;;  %s147_s0 = smov [#allocation2]  }
   0x4   :  { %v16_v6 = vld [vmem:[%s185_s1 + $0x8] sm:$0xff]  ;;  %s98_s1 = sshll.u32 %s147_s0, 4  ;;  %s99_s1 = int_to_ptr.vmem [resolvable:$true] %s98_s1 }
   0x5   :  { %v49_v17 = vand.u32 127, %v48_v16  ;;  %s124_s22 = scalar_lea.vmem %s99_s1, 128  ;;  %p129_p1 = scmp.lt.s32.totalorder %s99_s1, %s99_s1 }
   0x6   :  { %20 = vmax.xlane.f32.xlu0 %v13_v2  ;;  %p125_p0 = scmp.ne.s32.totalorder %s99_s1, %s124_s22  ;;  %p130_p2 = scmp.lt.s32.totalorder %s124_s22, %s124_s22 }
   0x8   :  { %p131_p3 = por %p130_p2, %p129_p1 }
   0xa   :  { %p132_p4 = pnand %p131_p3, %p125_p0 }
  0x13   :  { %51 = vperm.xlu1 %110, %v15_v4  }
  0x17   :  { %57 = vperm.xlu1 %110, %v17_v5  }
  0x1c   :  { %54 = vperm.xlu0 %111, %v16_v6  }
  0x8b   :  { %v19_v7 = vpop.xlane.xlu0 %18  ;;  %v23_v8 = vpop.xlane.xlu1 %22 }
  0x8c   :  { %v24_v9 = vsub.f32 %v12_v0, %v19_v7  ;;  %v26_v10 = vsub.f32 %v14_v1, %v23_v8 }
  0x8e   :  { %v27_v11 = vmul.f32 1.442695, %v24_v9  ;;  %v31_v12 = vmul.f32 1.442695, %v26_v10 }
  0x8f   :  { %v21_v13 = vpop.xlane.xlu0 %20  ;;  %v52_v19 = vpop.permute.xlu1 %51 }
  0x90   :  { %112 = vpow2.f32 %v27_v11  ;;  %v25_v14 = vsub.f32 %v13_v2, %v21_v13  ;;  %vm59_vm0 = vcmp.eq.s32.totalorder %v49_v17, %v52_v19 }
  0x91   :  { %114 = vpow2.f32 %v31_v12  ;;  %v62_v23 = vsel %vm59_vm0, %v12_v0, 0.0 }
  0x92   :  { %v29_v15 = vmul.f32 1.442695, %v25_v14 }
  0x93   :  { %v58_v24 = vpop.permute.xlu1 %57 }
  0x94   :  { %116 = vpow2.f32 %v29_v15  ;;  %vm61_vm2 = vcmp.eq.s32.totalorder %v49_v17, %v58_v24 }
  0x95   :  { %v64_v26 = vsel %vm61_vm2, %v14_v1, 0.0 }
  0x97   :  { %v55_v22 = vpop.permute.xlu0 %54 }
  0x98   :  { %vm60_vm1 = vcmp.eq.s32.totalorder %v49_v17, %v55_v22 }
  0x99   :  { %v63_v25 = vsel %vm60_vm1, %v13_v2, 0.0 }
  0x9d   :  { %v113_v18 = vpop.eup %112 }
  0x9e   :  { %33 = vadd.xlane.f32.xlu1 %v113_v18  ;;  %v115_v20 = vpop.eup %114 }
  0xa1   :  { %v117_v21 = vpop.eup %116 }
  0xa2   :  { %37 = vadd.xlane.f32.xlu1 %v115_v20  ;;  %35 = vadd.xlane.f32.xlu0 %v117_v21 }
  0xa6   :  { %65 = vadd.xlane.f32.xlu1 %v62_v23 }
  0xaa   :  { %67 = vadd.xlane.f32.xlu1 %v63_v25 }
  0xae   :  { %69 = vadd.xlane.f32.xlu1 %v64_v26 }
 0x127   :  { %v34_v27 = vpop.xlane.xlu1 %33 }
 0x128   :  { %118 = vlog2.f32 %v34_v27 }
 0x12b   :  { %v38_v28 = vpop.xlane.xlu1 %37  ;;  %v36_v29 = vpop.xlane.xlu0 %35 }
 0x12c   :  { %120 = vlog2.f32 %v38_v28 }
 0x12d   :  { %122 = vlog2.f32 %v36_v29 }
 0x12f   :  { %v66_v30 = vpop.xlane.xlu1 %65 }
 0x133   :  { %v68_v33 = vpop.xlane.xlu1 %67 }
 0x135   :  { %v119_v31 = vpop.eup %118 }
 0x136   :  { %v40_v32 = vmul.f32 0.6931472, %v119_v31 }
 0x137   :  { %v70_v42 = vpop.xlane.xlu1 %69 }
 0x138   :  { %v45_v35 = vadd.f32 %v40_v32, %v19_v7 }
 0x139   :  { %v121_v34 = vpop.eup %120 }
 0x13a   :  { %v123_v36 = vpop.eup %122  ;;  %v44_v37 = vmul.f32 0.6931472, %v121_v34  ;;  %v71_v40 = vsub.f32 %v45_v35, %v66_v30 }
 0x13b   :  { %v42_v38 = vmul.f32 0.6931472, %v123_v36 }
 0x13c   :  { %v47_v39 = vadd.f32 %v44_v37, %v23_v8  ;;  %v75_v45 = vsel %vm74_vm3, %v71_v40, 0.0 }
 0x13d   :  { %v46_v41 = vadd.f32 %v42_v38, %v21_v13 }
 0x13e   :  { %v73_v44 = vsub.f32 %v47_v39, %v70_v42 }
 0x13f   :  { %v72_v43 = vsub.f32 %v46_v41, %v68_v33 }
 0x140   :  { %v78_v48 = vsel %vm74_vm3, %v73_v44, 0.0 }
 0x141   :  { %v76_v46 = vsel %vm74_vm3, %v72_v43, 0.0 }
 0x142   :  { %v77_v47 = vadd.f32 %v76_v46, %v75_v45 }
 0x144   :  { %v79_v49 = vadd.f32 %v78_v48, %v77_v47 }
 0x146   :  { %80 = vadd.xlane.f32.xlu1 %v79_v49 }
 0x1cf   :  { %v81_v50 = vpop.xlane.xlu1 %80 }
 0x1d0   :  { %v82_v51 = vrot.slane %v81_v50, 4 }
 0x1d2   :  { %v83_v52 = vadd.f32 %v82_v51, %v81_v50 }
 0x1d4   :  { %v84_v53 = vrot.slane %v83_v52, 2 }
 0x1d6   :  { %v85_v54 = vadd.f32 %v84_v53, %v83_v52 }
 0x1d8   :  { %v86_v55 = vrot.slane %v85_v54, 1 }
 0x1da   :  { %v87_v56 = vadd.f32 %v86_v55, %v85_v54 }
 0x1dc   :  { %106 = vpush %v87_v56 }
 0x20d   :  { %s107_s21 = spop %106 }
 0x20e   :  { %v89_v57 = vstv %s107_s21 }
 0x20f   :  { %91 = vst [vmem:[#allocation2] sm:$0xff] %v89_v57 }
 0x210   :  { %135 = shalt.err (!%p132_p4)
}
 0x211   :  { %101 = dma.vmem_to_hbm [thread:$0]  %s99_s1, 128, %s186_s2, [#allocation3]  }
 0x212   :  { %144 = dma.done.wait [#allocation3], 128  }
 0x213   :  { %145 = vsyncadd [#allocation3], 4294967168 }
 0x214   :  { %105 = vsyncpa [#allocation3], 1 }

</bundles_post_ra>
